<compile_context>
chip_gen: v6e
topology: v6e:2x2x1
jax: 0.10.0
libtpu: 0.0.40
codegen_flags: <defaults>
</compile_context>

<pallas_src>
import functools
import random

import jax
import jax.numpy as jnp
from jax import lax
from jax.experimental import pallas as pl
from jax.experimental.pallas import tpu as pltpu


def _round_up(a, b):
    return ((a + b - 1) // b) * b


def _has_two_tensorcores():
    """Best-effort check for chips whose 'parallel' grid axes span 2 TCs."""
    try:
        kind = jax.devices()[0].device_kind.lower()
    except Exception:  # pragma: no cover - defensive
        return False
    return any(tag in kind for tag in ("v4", "v5p", "v7", "7x"))


def _trid_kernel(x_ref, stats_ref, o_ref, *, eps, inv_hw, inv_hwm1):
    # x_ref: (ROWS, HW)   stats_ref: (3, ROWS, 1) = [mu_random, var_random, bernoulli]
    # o_ref: (ROWS, HW)
    x = x_ref[...].astype(jnp.float32)

    # Per-row (per (n, c)) spatial statistics over the lane axis.
    mu = jnp.sum(x, axis=-1, keepdims=True) * inv_hw              # (ROWS, 1)
    diff = x - mu                                                 # only live for var
    # torch.Tensor.var defaults to the unbiased estimator (correction=1).
    var = jnp.sum(diff * diff, axis=-1, keepdims=True) * inv_hwm1  # (ROWS, 1)

    inv_sig = lax.rsqrt(var + eps)                                # (ROWS, 1), EUP

    mu_r = stats_ref[0]                                           # (ROWS, 1)
    var_r = stats_ref[1]                                          # (ROWS, 1)
    b = stats_ref[2]                                              # (ROWS, 1)

    # NOTE: matches the reference exactly — var_random (not its sqrt) mixes with sig.
    # scale = sig_mix / sig = 1 + b * (var_random / sig - 1); no explicit sqrt needed.
    scale = 1.0 + b * (var_r * inv_sig - 1.0)                     # (ROWS, 1)
    mu_mix = mu + b * (mu_r - mu)                                 # (ROWS, 1)
    offset = mu_mix - mu * scale                                  # (ROWS, 1)

    # out = (x - mu) * scale + mu_mix  ==  x * scale + offset : one full-tile FMA.
    o_ref[...] = (x * scale + offset).astype(o_ref.dtype)


def trid_pallas(x2d, stats, *, eps=1e-6, block_rows=None):
    """x2d: (NC, HW); stats: (3, NC, 1) float32 = [mu_random, var_random, bernoulli]."""
    nc, hw = x2d.shape
    LANE = 128
    SUB = 8

    # VMEM lane-padded width of one row (for budgeting only; HBM is NOT padded).
    hw_vmem = _round_up(hw, LANE)

    # Row tile targeting ~4 MiB (f32) input blocks; multiple of 8 (or the full NC).
    target_bytes = 4 << 20
    rows = max(SUB, (target_bytes // (4 * hw_vmem)) // SUB * SUB)
    if block_rows is not None:
        rows = max(SUB, (block_rows // SUB) * SUB)
    if rows >= nc:
        rows = nc  # full-dim block: any size satisfies the (8,128) rule
    grid_len = int(pl.cdiv(nc, rows))

    # On 2-TC chips prefer an even grid so the "parallel" axis splits across cores.
    if grid_len > 1 and grid_len % 2 == 1 and rows > SUB and _has_two_tensorcores():
        rows_half = max(SUB, ((rows // 2) // SUB) * SUB)
        if int(pl.cdiv(nc, rows_half)) % 2 == 0:
            rows = rows_half
            grid_len = int(pl.cdiv(nc, rows))

    inv_hw = 1.0 / hw
    # torch's unbiased var with a single element is NaN; we return 0 variance instead.
    inv_hwm1 = (1.0 / (hw - 1)) if hw > 1 else 0.0

    # VMEM budget: double-buffered in/out/stats blocks + headroom for the kernel
    # body's full-tile temporaries (x cast, diff, diff*diff), capped below the
    # smallest physical VMEM (v7x: 64 MiB/TC).
    tile_bytes = rows * hw_vmem * 4
    stats_bytes = 3 * rows * LANE * 4
    vmem_limit = 2 * (2 * tile_bytes + stats_bytes) + 3 * tile_bytes + (2 << 20)
    vmem_limit = max(16 << 20, min(vmem_limit, 48 << 20))

    kernel = functools.partial(_trid_kernel, eps=eps, inv_hw=inv_hw, inv_hwm1=inv_hwm1)

    out = pl.pallas_call(
        kernel,
        out_shape=jax.ShapeDtypeStruct((nc, hw), x2d.dtype),
        grid_spec=pltpu.PrefetchScalarGridSpec(
            num_scalar_prefetch=0,
            grid=(grid_len,),
            in_specs=[
                pl.BlockSpec((rows, hw), lambda i: (i, 0)),
                pl.BlockSpec((3, rows, 1), lambda i: (0, i, 0)),
            ],
            out_specs=pl.BlockSpec((rows, hw), lambda i: (i, 0)),
        ),
        compiler_params=pltpu.CompilerParams(
            dimension_semantics=("parallel",),
            vmem_limit_bytes=int(vmem_limit),
        ),
    )(x2d, stats)
    return out


def trid_forward(x, key, *, p=0.5, eps=1e-6, alpha=0.1):
    """TriD forward. x: (N, C, H, W) float32."""
    n, c, h, w = x.shape

    # random.random() > p -> identity branch (host RNG, like the PyTorch ref;
    # no device->host sync; the kernel itself is unaffected). Non-jittable gate.
    if random.random() > p:
        return x

    k_mu, k_var, k_beta, k_bern = jax.random.split(key, 4)
    nc = n * c
    x2d = x.reshape(nc, h * w)  # contiguous NCHW -> free reshape

    mu_random = jax.random.uniform(k_mu, (nc, 1), dtype=jnp.float32)
    var_random = jax.random.uniform(k_var, (nc, 1), dtype=jnp.float32)
    lmda = jax.random.beta(k_beta, alpha, alpha, (nc, 1)).astype(jnp.float32)
    bernoulli = jax.random.bernoulli(k_bern, lmda).astype(jnp.float32)
    stats = jnp.stack([mu_random, var_random, bernoulli], axis=0)  # (3, NC, 1)

    out2d = trid_pallas(x2d, stats, eps=eps)
    return out2d.reshape(n, c, h, w)


def _trid_ref(x, mu_random, var_random, bernoulli, eps=1e-6):
    """Pure-JAX reference for verification (mirrors the PyTorch module)."""
    n, c, h, w = x.shape
    mu = jnp.mean(x, axis=(2, 3), keepdims=True)
    var = jnp.var(x, axis=(2, 3), keepdims=True, ddof=1)
    sig = jnp.sqrt(var + eps)
    x_normed = (x - mu) / sig
    b = bernoulli.reshape(n, c, 1, 1)
    mu_mix = mu_random.reshape(n, c, 1, 1) * b + mu * (1.0 - b)
    sig_mix = var_random.reshape(n, c, 1, 1) * b + sig * (1.0 - b)
    return x_normed * sig_mix + mu_mix


def _check(N, C, H, W, key, block_rows=None):
    k_x, k_mu, k_var, k_beta, k_bern = jax.random.split(key, 5)
    x = jax.random.normal(k_x, (N, C, H, W), dtype=jnp.float32)
    nc = N * C
    mu_random = jax.random.uniform(k_mu, (nc, 1), dtype=jnp.float32)
    var_random = jax.random.uniform(k_var, (nc, 1), dtype=jnp.float32)
    lmda = jax.random.beta(k_beta, 0.1, 0.1, (nc, 1)).astype(jnp.float32)
    bernoulli = jax.random.bernoulli(k_bern, lmda).astype(jnp.float32)
    stats = jnp.stack([mu_random, var_random, bernoulli], axis=0)

    out = trid_pallas(x.reshape(nc, H * W), stats, block_rows=block_rows)
    out = jax.block_until_ready(out).reshape(N, C, H, W)

    ref = _trid_ref(x, mu_random, var_random, bernoulli)
    err = float(jnp.max(jnp.abs(out - ref)))
    assert jnp.allclose(out, ref, atol=1e-5, rtol=1e-5), err


if __name__ == "__main__":
    random.seed(0)
    key = jax.random.PRNGKey(0)
    k1, k2, k3, k4 = jax.random.split(key, 4)

    # HW a multiple of 128 (lane-dense fast path).
    _check(2, 4, 16, 16, k1)
    # HW not a multiple of 128 (full-dim lane block, masked tail store).
    _check(2, 4, 7, 7, k2)
    # NC not a multiple of the row block (partial edge row-block path).
    _check(3, 4, 7, 7, k3, block_rows=8)

    # Exercise the full forward (including the host-side probability gate).
    x = jax.random.normal(k4, (2, 4, 16, 16), dtype=jnp.float32)
    _ = jax.block_until_ready(trid_forward(x, k4))

    print("KERNEL_OK")
</pallas_src>

<mosaic_0001>
module attributes {stable_mosaic.version = 11 : i64} {
  func.func @_trid_kernel(%arg0: i32, %arg1: memref<8x256xf32, #tpu.memory_space<vmem>>, %arg2: memref<3x8x1xf32, #tpu.memory_space<vmem>>, %arg3: memref<8x256xf32, #tpu.memory_space<vmem>>) attributes {dimension_semantics = [#tpu.dimension_semantics<parallel>], iteration_bounds = array<i64: 1>, scalar_prefetch = 0 : i64, scratch_operands = 0 : i64, tpu.core_type = #tpu.core_type<tc>, window_params = [{transform_indices = @transform_0, window_bounds = array<i64: 8, 256>}, {transform_indices = @transform_1, window_bounds = array<i64: 3, 8, 1>}, {transform_indices = @transform_2, window_bounds = array<i64: 8, 256>}]} {
    %c0 = arith.constant 0 : index
    %c0_0 = arith.constant 0 : index
    %0 = vector.load %arg1[%c0, %c0_0] : memref<8x256xf32, #tpu.memory_space<vmem>>, vector<8x256xf32>
    %cst = arith.constant dense<0.000000e+00> : vector<8xf32>
    %1 = vector.multi_reduction <add>, %0, %cst [1] : vector<8x256xf32> to vector<8xf32>
    %2 = vector.shape_cast %1 : vector<8xf32> to vector<8x1xf32>
    %cst_1 = arith.constant 3.906250e-03 : f32
    %3 = vector.broadcast %cst_1 : f32 to vector<8x1xf32>
    %4 = arith.mulf %2, %3 : vector<8x1xf32>
    %5 = vector.broadcast %4 : vector<8x1xf32> to vector<8x256xf32>
    %6 = arith.subf %0, %5 : vector<8x256xf32>
    %7 = arith.mulf %6, %6 : vector<8x256xf32>
    %cst_2 = arith.constant dense<0.000000e+00> : vector<8xf32>
    %8 = vector.multi_reduction <add>, %7, %cst_2 [1] : vector<8x256xf32> to vector<8xf32>
    %9 = vector.shape_cast %8 : vector<8xf32> to vector<8x1xf32>
    %cst_3 = arith.constant 0.00392156886 : f32
    %10 = vector.broadcast %cst_3 : f32 to vector<8x1xf32>
    %11 = arith.mulf %9, %10 : vector<8x1xf32>
    %cst_4 = arith.constant 9.99999997E-7 : f32
    %12 = vector.broadcast %cst_4 : f32 to vector<8x1xf32>
    %13 = arith.addf %11, %12 : vector<8x1xf32>
    %14 = math.rsqrt %13 : vector<8x1xf32>
    %c0_5 = arith.constant 0 : index
    %c0_6 = arith.constant 0 : index
    %c0_7 = arith.constant 0 : index
    %15 = vector.load %arg2[%c0_5, %c0_6, %c0_7] : memref<3x8x1xf32, #tpu.memory_space<vmem>>, vector<1x8x1xf32>
    %16 = vector.shape_cast %15 : vector<1x8x1xf32> to vector<8x1xf32>
    %c1 = arith.constant 1 : index
    %c0_8 = arith.constant 0 : index
    %c0_9 = arith.constant 0 : index
    %17 = vector.load %arg2[%c1, %c0_8, %c0_9] : memref<3x8x1xf32, #tpu.memory_space<vmem>>, vector<1x8x1xf32>
    %18 = vector.shape_cast %17 : vector<1x8x1xf32> to vector<8x1xf32>
    %c2 = arith.constant 2 : index
    %c0_10 = arith.constant 0 : index
    %c0_11 = arith.constant 0 : index
    %19 = vector.load %arg2[%c2, %c0_10, %c0_11] : memref<3x8x1xf32, #tpu.memory_space<vmem>>, vector<1x8x1xf32>
    %20 = vector.shape_cast %19 : vector<1x8x1xf32> to vector<8x1xf32>
    %21 = arith.mulf %18, %14 : vector<8x1xf32>
    %cst_12 = arith.constant 1.000000e+00 : f32
    %22 = vector.broadcast %cst_12 : f32 to vector<8x1xf32>
    %23 = arith.subf %21, %22 : vector<8x1xf32>
    %24 = arith.mulf %20, %23 : vector<8x1xf32>
    %cst_13 = arith.constant 1.000000e+00 : f32
    %25 = vector.broadcast %cst_13 : f32 to vector<8x1xf32>
    %26 = arith.addf %25, %24 : vector<8x1xf32>
    %27 = arith.subf %16, %4 : vector<8x1xf32>
    %28 = arith.mulf %20, %27 : vector<8x1xf32>
    %29 = arith.addf %4, %28 : vector<8x1xf32>
    %30 = arith.mulf %4, %26 : vector<8x1xf32>
    %31 = arith.subf %29, %30 : vector<8x1xf32>
    %32 = vector.broadcast %26 : vector<8x1xf32> to vector<8x256xf32>
    %33 = arith.mulf %0, %32 : vector<8x256xf32>
    %34 = vector.broadcast %31 : vector<8x1xf32> to vector<8x256xf32>
    %35 = arith.addf %33, %34 : vector<8x256xf32>
    %c0_14 = arith.constant 0 : index
    %c0_15 = arith.constant 0 : index
    %36 = vector.load %arg3[%c0_14, %c0_15] : memref<8x256xf32, #tpu.memory_space<vmem>>, vector<8x256xf32>
    tpu.vector_store %arg3[%c0_14, %c0_15], %35 {strides = array<i32>} : memref<8x256xf32, #tpu.memory_space<vmem>>, vector<8x256xf32>,
    return
  }
  func.func @transform_0(%arg0: i32) -> (i32, i32) {
    %c0_i32 = arith.constant 0 : i32
    %c0_i32_0 = arith.constant 0 : i32
    return %arg0, %c0_i32 : i32, i32
  }
  func.func @transform_1(%arg0: i32) -> (i32, i32, i32) {
    %c0_i32 = arith.constant 0 : i32
    %c0_i32_0 = arith.constant 0 : i32
    %c0_i32_1 = arith.constant 0 : i32
    return %c0_i32, %arg0, %c0_i32_0 : i32, i32, i32
  }
  func.func @transform_2(%arg0: i32) -> (i32, i32) {
    %c0_i32 = arith.constant 0 : i32
    %c0_i32_0 = arith.constant 0 : i32
    return %arg0, %c0_i32 : i32, i32
  }
}

</mosaic_0001>

<bundles_post_ra>
// kernel: tpu_custom_call.1
= control target key start
LH: loop header
LB: loop body
LE: loop exit
PB: predicated region body
PF: predicated region fallthrough
CT: control target
= control target key end

     0   :  { %s138_s0 = inlined_call_operand.vmem [shape: f32[8,256], index: 0, kind: input, shape index: {}]   ;;  %s139_s1 = inlined_call_operand.vmem [shape: f32[3,8,1], index: 1, kind: input, shape index: {}]   ;;  %s140_s2 = inlined_call_operand.hbm [shape: f32[8,256], index: 2, kind: output, shape index: {}]  }
   0x1   :  { %v12_v0 = vld [vmem:[%s138_s0] sm:$0xff]  ;;  %v13_v1 = vld [vmem:[%s138_s0 + $0x8] sm:$0xff] }
   0x2   :  { %7 = vsyncpa [#allocation3], 0  ;;  %v14_v2 = vadd.f32 %v13_v1, %v12_v0  ;;  %v103_v10 = vmov 0   ;;  %v28_v14 = vld [vmem:[%s139_s1] sm:$0xff]  ;;  %v72_v15 = vld [vmem:[%s139_s1 + $0x8] sm:$0xff]  ;;  %s104_s18 = smov [#allocation2]  }
   0x3   :  { %77 = vset.pattern.permute.xlu1 %v103_v10  ;;  %78 = vset.pattern.permute.xlu0 %v103_v10  ;;  %v73_v19 = vld [vmem:[%s139_s1 + $0x10] sm:$0xff]  ;;  %s64_s19 = sshll.u32 %s104_s18, 4  ;;  %s65_s19 = int_to_ptr.vmem [resolvable:$true] %s64_s19 }
   0x4   :  { %15 = vadd.xlane.f32.xlu0 %v14_v2  ;;  %s81_s1 = scalar_lea.vmem %s65_s19, 256  ;;  %p86_p1 = scmp.lt.s32.totalorder %s65_s19, %s65_s19 }
   0x5   :  { %p82_p0 = scmp.ne.s32.totalorder %s65_s19, %s81_s1  ;;  %p87_p2 = scmp.lt.s32.totalorder %s81_s1, %s81_s1 }
   0x7   :  { %p88_p3 = por %p87_p2, %p86_p1 }
   0x9   :  { %p89_p4 = pnand %p88_p3, %p82_p0 }
  0x8d   :  { %v16_v3 = vpop.xlane.xlu0 %15 }
  0x8e   :  { %v17_v4 = vmul.f32 0.00390625, %v16_v3 }
  0x90   :  { %v18_v5 = vsub.f32 %v12_v0, %v17_v4  ;;  %v19_v6 = vsub.f32 %v13_v1, %v17_v4  ;;  %v37_v18 = vsub.f32 %v28_v14, %v17_v4 }
  0x92   :  { %v20_v7 = vmul.f32 %v18_v5, %v18_v5  ;;  %v21_v8 = vmul.f32 %v19_v6, %v19_v6  ;;  %v38_v22 = vmul.f32 %v73_v19, %v37_v18 }
  0x94   :  { %v22_v9 = vadd.f32 %v21_v8, %v20_v7  ;;  %v39_v25 = vadd.f32 %v38_v22, %v17_v4 }
  0x96   :  { %23 = vadd.xlane.f32.xlu0 %v22_v9 }
 0x11f   :  { %v24_v11 = vpop.xlane.xlu0 %23 }
 0x120   :  { %v25_v12 = vmul.f32 0.003921569, %v24_v11 }
 0x122   :  { %v26_v13 = vadd.f32 1e-06, %v25_v12 }
 0x124   :  { %79 = vrsqrt.f32 %v26_v13 }
 0x131   :  { %v80_v16 = vpop.eup %79 }
 0x132   :  { %v33_v17 = vmul.f32 %v80_v16, %v72_v15 }
 0x134   :  { %v74_v20 = vadd.f32 -1.0, %v33_v17 }
 0x136   :  { %v35_v21 = vmul.f32 %v74_v20, %v73_v19 }
 0x138   :  { %v36_v23 = vadd.f32 1.0, %v35_v21 }
 0x13a   :  { %44 = vperm.xlu1 %77, %v36_v23   ;;  %v40_v24 = vmul.f32 %v36_v23, %v17_v4 }
 0x13c   :  { %v41_v26 = vsub.f32 %v39_v25, %v40_v24 }
 0x13e   :  { %51 = vperm.xlu1 %77, %v41_v26  }
 0x1b5   :  { %v45_v27 = vpop.permute.xlu1 %44 }
 0x1b6   :  { %v47_v28 = vmul.f32 %v45_v27, %v12_v0  ;;  %v48_v29 = vmul.f32 %v45_v27, %v13_v1 }
 0x1b9   :  { %v52_v30 = vpop.permute.xlu1 %51 }
 0x1ba   :  { %v54_v31 = vadd.f32 %v52_v30, %v47_v28  ;;  %v55_v32 = vadd.f32 %v52_v30, %v48_v29 }
 0x1bc   :  { %56 = vst [vmem:[#allocation2] sm:$0xff] %v54_v31  ;;  %57 = vst [vmem:[#allocation2 + $0x8] sm:$0xff] %v55_v32 }
 0x1bd   :  { %92 = shalt.err (!%p89_p4)
}
 0x1be   :  { %67 = dma.vmem_to_hbm [thread:$0]  %s65_s19, 256, %s140_s2, [#allocation3]  }
 0x1bf   :  { %101 = dma.done.wait [#allocation3], 256  }
 0x1c0   :  { %102 = vsyncadd [#allocation3], 4294967040 }
 0x1c1   :  { %71 = vsyncpa [#allocation3], 1 }

</bundles_post_ra>
